<compile_context>
chip_gen: v7x
topology: tpu7x:2x2x1
jax: 0.10.0
libtpu: 0.0.40
codegen_flags: <defaults>
</compile_context>

<pallas_src>
import functools

import jax
import jax.numpy as jnp
from jax.experimental import pallas as pl
from jax.experimental.pallas import tpu as pltpu


def _learned_noise_kernel(w_ref, x_ref, n_ref, o_ref, *, native_add):
    # w_ref: (1,)          f32 scalar weight in SMEM
    # x_ref: (BT, CT, HWT) input tile (lane-dense: H*W on the lane axis)
    # n_ref: (BT, 1, HWT)  f32 noise tile, broadcast over the CT channels
    # o_ref: (BT, CT, HWT) output tile
    w = w_ref[0]
    nw = n_ref[...].astype(jnp.float32) * w        # cheap (BT, 1, HWT) row in f32
    if native_add:
        # bf16-native broadcast add (v6e/v7x): halves vreg + vld/vst pressure.
        o_ref[...] = x_ref[...] + nw.astype(o_ref.dtype)
    else:
        o_ref[...] = (x_ref[...].astype(jnp.float32) + nw).astype(o_ref.dtype)


def _device_tuning():
    """Per-generation (target_tile_bytes, vmem_limit_bytes, bf16_native_vpu)."""
    kind = ""
    try:
        kind = jax.devices()[0].device_kind.lower()
    except Exception:  # pragma: no cover - defensive; fall back to conservative
        pass
    if "v7" in kind:
        # 64 MiB physical VMEM: ~6 MiB tiles double-buffered (x + out) ~ 24 MiB.
        return 6 << 20, 48 << 20, True
    if "v6" in kind:
        return 6 << 20, 48 << 20, True
    if "v5 lite" in kind or "v5e" in kind or "v5lite" in kind:
        # 16 MiB default scoped VMEM: keep tiles modest, raise the limit a bit.
        return 3 << 20, 32 << 20, False
    if "v5" in kind:  # v5p
        return 4 << 20, 48 << 20, False
    return 2 << 20, None, False


def _ceil_div(a, b):
    return -(-a // b)


def _choose_tiles(B, C, HW, itemsize, target_bytes, min_split_bytes=2 << 20):
    """Block shape (BT, CT, HWT) for (B, C, HW) tensors.

    TPU (8,128) rule on the last two block dims:
      * HWT is a multiple of 128, or HWT == HW.
      * CT  is a multiple of 8,   or CT  == C.
    Each x/out tile is kept at or under ~target_bytes.
    """
    ct_min = C if C < 8 else 8

    # 1) Lane axis: keep full HW if ct_min rows fit, else tile HW in x128 chunks.
    if ct_min * HW * itemsize <= target_bytes:
        HWT = HW
    else:
        HWT = max(128, (target_bytes // (ct_min * itemsize)) // 128 * 128)
        HWT = min(HWT, HW)

    # 2) Channel axis: multiples of 8 (or full C), within the byte budget.
    max_ct = max(1, target_bytes // (HWT * itemsize))
    if C <= max_ct:
        CT = C
    else:
        CT = min(C, max(8, (max_ct // 8) * 8))

    # 3) Batch axis: grow the block along batch when a (CT, HWT) tile is small.
    tile_bytes = CT * HWT * itemsize
    BT = max(1, min(B, target_bytes // max(1, tile_bytes)))

    # 4) Guarantee >= 2 grid steps when there is enough work for two cores
    #    (v7x has 2 TensorCores; a 1-step grid idles one of them).
    steps = _ceil_div(B, BT) * _ceil_div(C, CT) * _ceil_div(HW, HWT)
    if steps == 1 and B * C * HW * itemsize >= min_split_bytes:
        if B >= 2:
            BT = _ceil_div(B, 2)
        elif C >= 16:
            CT = min(C, ((_ceil_div(C, 2) + 7) // 8) * 8)
        elif HW >= 256:
            HWT = min(HW, ((_ceil_div(HW, 2) + 127) // 128) * 128)

    return BT, CT, HWT


def learned_noise_forward(x, noise, weight):
    """x: (B, C, H, W), noise: (B, 1, H, W) f32, weight: array of shape (1,)."""
    B, C, H, W = x.shape
    assert noise.shape == (B, 1, H, W)
    HW = H * W

    target_bytes, vmem_limit, bf16_native = _device_tuning()

    # Lane-dense layout: full H*W extent on the last (lane) axis.
    x3 = jnp.reshape(x, (B, C, HW))
    n3 = jnp.reshape(noise, (B, 1, HW)).astype(jnp.float32)  # keep noise in f32
    w1 = jnp.reshape(weight, (1,)).astype(jnp.float32)       # scalar weight, f32

    BT, CT, HWT = _choose_tiles(B, C, HW, x3.dtype.itemsize, target_bytes)
    grid = (pl.cdiv(B, BT), pl.cdiv(C, CT), pl.cdiv(HW, HWT))

    native_add = bool(bf16_native) and x3.dtype == jnp.bfloat16
    kernel = functools.partial(_learned_noise_kernel, native_add=native_add)

    cp_kwargs = dict(dimension_semantics=("parallel", "parallel", "parallel"))
    if vmem_limit is not None:
        cp_kwargs["vmem_limit_bytes"] = int(vmem_limit)

    out3 = pl.pallas_call(
        kernel,
        out_shape=jax.ShapeDtypeStruct((B, C, HW), x.dtype),
        grid_spec=pl.GridSpec(
            grid=grid,
            in_specs=[
                pl.BlockSpec(memory_space=pltpu.MemorySpace.SMEM),       # weight
                pl.BlockSpec((BT, CT, HWT), lambda b, c, s: (b, c, s)),  # input
                pl.BlockSpec((BT, 1, HWT), lambda b, c, s: (b, 0, s)),   # noise (bcast C)
            ],
            out_specs=pl.BlockSpec((BT, CT, HWT), lambda b, c, s: (b, c, s)),
        ),
        compiler_params=pltpu.CompilerParams(**cp_kwargs),
    )(w1, x3, n3)

    return jnp.reshape(out3, (B, C, H, W))


if __name__ == "__main__":
    # Small shapes consistent with the module: batch=2, c=4, h=16, w=16
    B, C, H, W = 2, 4, 16, 16

    key = jax.random.PRNGKey(0)
    kx, kn = jax.random.split(key)
    x = jax.random.normal(kx, (B, C, H, W), dtype=jnp.float32)
    # self.noise.normal_() — re-sampled N(0,1) each forward (generated here as glue)
    noise = jax.random.normal(kn, (B, 1, H, W), dtype=jnp.float32)

    # Deterministic parameter init per module __init__: weight = zeros(1)
    weight = jnp.zeros((1,), dtype=jnp.float32)

    out = jax.block_until_ready(learned_noise_forward(x, noise, weight))
    ref = x + noise * weight[0]
    assert jnp.allclose(out, ref, atol=1e-6), "mismatch vs reference (w=0)"

    # Exercise the broadcast path with a nonzero weight too.
    w2 = jnp.array([0.1], dtype=jnp.float32)
    out2 = jax.block_until_ready(learned_noise_forward(x, noise, w2))
    ref2 = x + noise * w2[0]
    assert jnp.allclose(out2, ref2, atol=1e-6), "mismatch vs reference (w=0.1)"

    # Exercise the bf16 path (native bf16 broadcast-add on v6e/v7x).
    xb = x.astype(jnp.bfloat16)
    out3 = jax.block_until_ready(learned_noise_forward(xb, noise, w2))
    ref3 = xb.astype(jnp.float32) + noise * w2[0]
    assert jnp.allclose(out3.astype(jnp.float32), ref3, atol=5e-2, rtol=5e-2), \
        "mismatch vs reference (bf16)"

    print("KERNEL_OK")
</pallas_src>

<mosaic_0001>
module attributes {stable_mosaic.version = 11 : i64} {
  func.func @_learned_noise_kernel(%arg0: i32, %arg1: i32, %arg2: i32, %arg3: memref<1xf32, #tpu.memory_space<smem>>, %arg4: memref<2x4x256xf32, #tpu.memory_space<vmem>>, %arg5: memref<2x1x256xf32, #tpu.memory_space<vmem>>, %arg6: memref<2x4x256xf32, #tpu.memory_space<vmem>>) attributes {dimension_semantics = [#tpu.dimension_semantics<parallel>, #tpu.dimension_semantics<parallel>, #tpu.dimension_semantics<parallel>], iteration_bounds = array<i64: 1, 1, 1>, scalar_prefetch = 0 : i64, scratch_operands = 0 : i64, tpu.core_type = #tpu.core_type<tc>, window_params = [{transform_indices = @transform_0, window_bounds = array<i64: 1>}, {transform_indices = @transform_1, window_bounds = array<i64: 2, 4, 256>}, {transform_indices = @transform_2, window_bounds = array<i64: 2, 1, 256>}, {transform_indices = @transform_3, window_bounds = array<i64: 2, 4, 256>}]} {
    %c0 = arith.constant 0 : index
    %0 = memref.load %arg3[%c0] : memref<1xf32, #tpu.memory_space<smem>>
    %c0_0 = arith.constant 0 : index
    %c0_1 = arith.constant 0 : index
    %c0_2 = arith.constant 0 : index
    %1 = vector.load %arg5[%c0_0, %c0_1, %c0_2] : memref<2x1x256xf32, #tpu.memory_space<vmem>>, vector<2x1x256xf32>
    %2 = vector.broadcast %0 : f32 to vector<2x1x256xf32>
    %3 = arith.mulf %1, %2 : vector<2x1x256xf32>
    %c0_3 = arith.constant 0 : index
    %c0_4 = arith.constant 0 : index
    %c0_5 = arith.constant 0 : index
    %4 = vector.load %arg4[%c0_3, %c0_4, %c0_5] : memref<2x4x256xf32, #tpu.memory_space<vmem>>, vector<2x4x256xf32>
    %5 = vector.broadcast %3 : vector<2x1x256xf32> to vector<2x4x256xf32>
    %6 = arith.addf %4, %5 : vector<2x4x256xf32>
    %c0_6 = arith.constant 0 : index
    %c0_7 = arith.constant 0 : index
    %c0_8 = arith.constant 0 : index
    %7 = vector.load %arg6[%c0_6, %c0_7, %c0_8] : memref<2x4x256xf32, #tpu.memory_space<vmem>>, vector<2x4x256xf32>
    tpu.vector_store %arg6[%c0_6, %c0_7, %c0_8], %6 {strides = array<i32>} : memref<2x4x256xf32, #tpu.memory_space<vmem>>, vector<2x4x256xf32>,
    return
  }
  func.func @transform_0(%arg0: i32, %arg1: i32, %arg2: i32) -> i32 {
    %c0_i32 = arith.constant 0 : i32
    %c0_i32_0 = arith.constant 0 : i32
    return %c0_i32 : i32
  }
  func.func @transform_1(%arg0: i32, %arg1: i32, %arg2: i32) -> (i32, i32, i32) {
    %c0_i32 = arith.constant 0 : i32
    return %arg0, %arg1, %arg2 : i32, i32, i32
  }
  func.func @transform_2(%arg0: i32, %arg1: i32, %arg2: i32) -> (i32, i32, i32) {
    %c0_i32 = arith.constant 0 : i32
    %c0_i32_0 = arith.constant 0 : i32
    return %arg0, %c0_i32, %arg2 : i32, i32, i32
  }
  func.func @transform_3(%arg0: i32, %arg1: i32, %arg2: i32) -> (i32, i32, i32) {
    %c0_i32 = arith.constant 0 : i32
    return %arg0, %arg1, %arg2 : i32, i32, i32
  }
}

</mosaic_0001>

<bundles_post_ra>
// kernel: tpu_custom_call.1
= control target key start
LH: loop header
LB: loop body
LE: loop exit
PB: predicated region body
PF: predicated region fallthrough
CT: control target
= control target key end

     0   :  { %9 = vsyncpa [#allocation4], 0  ;;  %s196_s0 = inlined_call_operand.<no memory space> [shape: f32[1], index: 0, kind: input, shape index: {}]   ;;  %s197_s1 = inlined_call_operand.hbm [shape: f32[2,4,256], index: 1, kind: input, shape index: {}]   ;;  %s198_s2 = inlined_call_operand.vmem [shape: f32[2,1,256], index: 2, kind: input, shape index: {}]   ;;  %s199_s3 = inlined_call_operand.hbm [shape: f32[2,4,256], index: 3, kind: output, shape index: {}]  }
   0x1   :  { %10 = vsyncpa [#allocation5], 0  ;;  %s133_s12 = smov [#allocation3]   ;;  %s85_s16 = scalar_lea.hbm %s197_s1, 256 }
   0x2   :  { %s18_s13 = sshll.u32 %s133_s12, 4  ;;  %p86_p0 = scmp.ne.s32.totalorder %s197_s1, %s85_s16  ;;  %s19_s13 = int_to_ptr.vmem [resolvable:$true] %s18_s13 }
   0x3   :  { %p89_p1 = scmp.lt.u32.totalorder %s85_s16, %s197_s1 }
   0x5   :  { %p91_p2 = pnand %p89_p1, %p86_p0 }
   0x7   :  { %94 = shalt.err (!%p91_p2)
}
   0x8   :  { %s95_s21 = scalar_lea.vmem %s19_s13, 256  ;;  %p100_p4 = scmp.lt.s32.totalorder %s19_s13, %s19_s13 }
   0x9   :  { %p96_p3 = scmp.ne.s32.totalorder %s19_s13, %s95_s21  ;;  %p101_p5 = scmp.lt.s32.totalorder %s95_s21, %s95_s21 }
   0xb   :  { %p102_p6 = por %p101_p5, %p100_p4 }
   0xd   :  { %p103_p7 = pnand %p102_p6, %p96_p3 }
   0xf   :  { %106 = shalt.err (!%p103_p7)
}
  0x10   :  { %s134_s22 = smov 128   ;;  %s135_s23 = smov 8  }
  0x11   :  { %24 = dma.hbm_to_vmem [thread:$0]  %s197_s1, 256, %s19_s13, [#allocation4], %s134_s22, %s134_s22, %s135_s23  }
  0x12   :  { %129 = dma.done.wait [#allocation4], 256  }
  0x13   :  { %130 = vsyncadd [#allocation4], 4294967040  ;;  %v40_v0 = vlaneseq  ;;  %v33_v2 = vstv %s196_s0  ;;  %v31_v5 = vld [vmem:[%s198_s2] sm:$0x3]  ;;  %v32_v6 = vld [vmem:[%s198_s2 + $0x2] sm:$0x3] }
  0x14   :  { %v34_v7 = vmul.f32 %v33_v2, %v31_v5  ;;  %v35_v8 = vmul.f32 %v33_v2, %v32_v6  ;;  %v36_v13 = vld [vmem:[#allocation3] sm:$0xff]  ;;  %v37_v14 = vld [vmem:[#allocation3 + $0x8] sm:$0xff]  ;;  %s136_s1 = smov [#allocation6]  }
  0x15   :  { %v41_v1 = vshrl.u32 %v40_v0, 7  ;;  %s69_s0 = sshll.u32 %s136_s1, 4  ;;  %s70_s0 = int_to_ptr.vmem [resolvable:$true] %s69_s0 }
  0x16   :  { %s107_s5 = scalar_lea.vmem %s70_s0, 256  ;;  %p112_p9 = scmp.lt.s32.totalorder %s70_s0, %s70_s0 }
  0x17   :  { %v42_v3 = vsub.s32 0, %v41_v1  ;;  %v46_v4 = vsub.s32 1, %v41_v1  ;;  %p108_p8 = scmp.ne.s32.totalorder %s70_s0, %s107_s5  ;;  %p113_p10 = scmp.lt.s32.totalorder %s107_s5, %s107_s5 }
  0x19   :  { %v43_v9 = vrot.slane %v34_v7, %v42_v3  ;;  %v47_v10 = vrot.slane %v34_v7, %v46_v4  ;;  %v51_v11 = vrot.slane %v35_v8, %v42_v3  ;;  %v55_v12 = vrot.slane %v35_v8, %v46_v4  ;;  %p114_p11 = por %p113_p10, %p112_p9 }
  0x1b   :  { %v56_v15 = vcombine.low %v43_v9, %v47_v10  ;;  %v57_v16 = vcombine.low %v51_v11, %v55_v12  ;;  %p115_p12 = pnand %p114_p11, %p108_p8 }
  0x1d   :  { %v60_v17 = vadd.f32 %v56_v15, %v36_v13  ;;  %v61_v18 = vadd.f32 %v57_v16, %v37_v14 }
  0x1f   :  { %62 = vst [vmem:[#allocation6] sm:$0xff] %v60_v17  ;;  %63 = vst [vmem:[#allocation6 + $0x8] sm:$0xff] %v61_v18 }
  0x20   :  { %118 = shalt.err (!%p115_p12)
}
  0x21   :  { %s119_s7 = scalar_lea.hbm %s199_s3, 256 }
  0x22   :  { %p120_p13 = scmp.ne.s32.totalorder %s199_s3, %s119_s7  ;;  %p123_p0 = scmp.lt.u32.totalorder %s119_s7, %s199_s3 }
  0x24   :  { %p125_p1 = pnand %p123_p0, %p120_p13 }
  0x26   :  { %128 = shalt.err (!%p125_p1)
}
  0x27   :  { %75 = dma.vmem_to_hbm [thread:$0]  %s70_s0, 256, %s199_s3, [#allocation5], %s134_s22, %s134_s22, %s135_s23  }
  0x28   :  { %131 = dma.done.wait [#allocation5], 256  }
  0x29   :  { %132 = vsyncadd [#allocation5], 4294967040 }
  0x2a   :  { %79 = vsyncpa [#allocation4], 1 }
  0x2b   :  { %80 = vsyncpa [#allocation5], 1 }

</bundles_post_ra>
